<compile_context>
chip_gen: v5e
topology: v5e:2x2
jax: 0.10.0
libtpu: 0.0.40
codegen_flags: <defaults>
</compile_context>

<pallas_src>
import functools

import jax
import jax.numpy as jnp
from jax import lax
from jax.experimental import pallas as pl
from jax.experimental.pallas import tpu as pltpu


# ---------------- in-kernel constant builders (VPU iota/compare, no DMA) -----

def _pool_row_matrix(hp, h):
    # PH[p, r] = 0.25 where r in [4p, 4p+4)  ->  (PH @ x) averages rows in groups of 4
    p = lax.broadcasted_iota(jnp.int32, (hp, h), 0)
    r = lax.broadcasted_iota(jnp.int32, (hp, h), 1)
    return jnp.where((r >= 4 * p) & (r < 4 * p + 4), 0.25, 0.0).astype(jnp.float32)


def _pool_col_matrix(w, wp):
    # PW[c, q] = 0.25 where c in [4q, 4q+4)  ->  (x @ PW) averages cols in groups of 4
    c = lax.broadcasted_iota(jnp.int32, (w, wp), 0)
    q = lax.broadcasted_iota(jnp.int32, (w, wp), 1)
    return jnp.where((c >= 4 * q) & (c < 4 * q + 4), 0.25, 0.0).astype(jnp.float32)


def _row_shift_matrix(n, o):
    # S[i, j] = 1 if j == i + o  ->  (S @ d)[i, :] = d[i+o, :]  (zero out of bounds)
    i = lax.broadcasted_iota(jnp.int32, (n, n), 0)
    j = lax.broadcasted_iota(jnp.int32, (n, n), 1)
    return jnp.where(j == i + o, 1.0, 0.0).astype(jnp.float32)


def _col_shift_matrix_T(n, o):
    # T[r, c] = 1 if r == c + o  ->  (d @ T)[:, c] = d[:, c+o]  (zero out of bounds)
    r = lax.broadcasted_iota(jnp.int32, (n, n), 0)
    c = lax.broadcasted_iota(jnp.int32, (n, n), 1)
    return jnp.where(r == c + o, 1.0, 0.0).astype(jnp.float32)


# ---------------- kernel ------------------------------------------------------

def _spa_kernel(org_ref, enh_ref, out_ref, *, use_roll, unroll):
    bt, _, h, w = org_ref.shape
    hp, wp = out_ref.shape[1], out_ref.shape[2]

    # Constants hoisted out of the per-image loop; generated in-register (no DMA).
    ph = _pool_row_matrix(hp, h)          # (hp, h)
    pw = _pool_col_matrix(w, wp)          # (w, wp)

    if use_roll:
        # Boundary masks for wrap-around suppression (built once, reused for all images).
        row = lax.broadcasted_iota(jnp.int32, (hp, wp), 0)
        col = lax.broadcasted_iota(jnp.int32, (hp, wp), 1)
        m_top = (row >= 1).astype(jnp.float32)          # valid where i-1 exists
        m_bot = (row <= hp - 2).astype(jnp.float32)     # valid where i+1 exists
        m_lft = (col >= 1).astype(jnp.float32)          # valid where j-1 exists
        m_rgt = (col <= wp - 2).astype(jnp.float32)     # valid where j+1 exists
    else:
        shm = _row_shift_matrix(hp, -1)    # up    neighbor d[i-1, j]
        shp = _row_shift_matrix(hp, +1)    # down  neighbor d[i+1, j]
        swmT = _col_shift_matrix_T(wp, -1)  # left  neighbor d[i, j-1] (right-applied)
        swpT = _col_shift_matrix_T(wp, +1)  # right neighbor d[i, j+1] (right-applied)

    def mm(a, b):
        return jnp.dot(a, b, preferred_element_type=jnp.float32)

    def sq(x):
        return x * x

    def body(t, carry):
        # channel mean of the difference; pooling of the difference
        # (all ops are linear, so this matches mean/pool of each image separately)
        m = jnp.mean(org_ref[t].astype(jnp.float32)
                     - enh_ref[t].astype(jnp.float32), axis=0)     # (h, w)
        d = mm(mm(ph, m), pw)                                       # pooled diff (hp, wp)

        if use_roll:
            # XLU rolls + VPU masks; accumulate each term immediately (minimal liveness).
            up = pltpu.roll(d, 1, 0) * m_top      # d[i-1, j]
            dn = pltpu.roll(d, -1, 0) * m_bot     # d[i+1, j]
            e = sq(d - pltpu.roll(d, 1, 1) * m_lft)        # left       d[i, j-1]
            e += sq(d - pltpu.roll(d, -1, 1) * m_rgt)      # right      d[i, j+1]
            e += sq(d - up)                                # up
            e += sq(d - dn)                                # down
            e += sq(d - pltpu.roll(up, 1, 1) * m_lft)      # left_up    d[i-1, j-1]
            e += sq(d - pltpu.roll(up, -1, 1) * m_rgt)     # right_up   d[i-1, j+1]
            e += sq(d - pltpu.roll(dn, 1, 1) * m_lft)      # left_down  d[i+1, j-1]
            e += sq(d - pltpu.roll(dn, -1, 1) * m_rgt)     # right_down d[i+1, j+1]
        else:
            rm = mm(shm, d)                   # d[i-1, j]
            rp = mm(shp, d)                   # d[i+1, j]
            e = sq(d - mm(d, swmT))           # left
            e += sq(d - mm(d, swpT))          # right
            e += sq(d - rm)                   # up
            e += sq(d - rp)                   # down
            e += sq(d - mm(rm, swmT))         # left_up
            e += sq(d - mm(rm, swpT))         # right_up
            e += sq(d - mm(rp, swmT))         # left_down
            e += sq(d - mm(rp, swpT))         # right_down

        out_ref[t] = e
        return carry

    if bt == 1:
        body(0, None)                               # static index, no loop machinery
    else:
        lax.fori_loop(0, bt, body, None, unroll=max(1, min(unroll, bt)))


# ---------------- wrapper -----------------------------------------------------

def _pick_bt(b, max_bt):
    """Largest batch-block that (a) fits the VMEM budget and (b) leaves >= min(4, b)
    grid steps (pipeline overlap; >=2 even steps keeps both v7x TCs busy)."""
    target_steps = min(4, b)
    cands = [bt for bt in range(1, max(1, min(b, max_bt)) + 1)
             if b % bt == 0 and (b // bt) >= target_steps]
    if not cands:
        return 1
    even = [bt for bt in cands if (b // bt) % 2 == 0]
    return max(even if even else cands)


def l_spa(org, enhance):
    """Pallas implementation of L_spa.forward(org, enhance)."""
    assert org.shape == enhance.shape
    b, c, h, w = org.shape
    assert h % 4 == 0 and w % 4 == 0, "AvgPool2d(4) requires h, w divisible by 4"
    hp, wp = h // 4, w // 4

    # Keep the native input dtype (bf16 stays bf16); the kernel upcasts after the DMA,
    # halving HBM traffic for sub-f32 inputs (dominant lever on v5e).
    itemsize = jnp.dtype(org.dtype).itemsize

    # Generation-aware VMEM budget (128 MiB on v5e/v6e, 64 MiB per TC on v7x).
    try:
        vmem_cap = int(pltpu.get_tpu_info().vmem_capacity_bytes)
    except Exception:  # not queryable (e.g. interpret mode) -> conservative default
        vmem_cap = 64 * 1024 * 1024
    vmem_limit = min((vmem_cap * 3) // 4, 96 * 1024 * 1024)

    unroll = 2
    # VMEM estimate: 2 inputs x 2 pipeline buffers per batch element, plus the bounded
    # in-flight f32 working set (upcast slabs, (h,w) diff, pooled temps) per unrolled
    # image, plus double-buffered output blocks.  Use half the scoped limit as budget
    # to leave internal-scratch headroom (matters most on v7x).
    per_b_in = 4 * c * h * w * itemsize
    working = unroll * (2 * c + 2) * h * w * 4
    out_buf = 4 * hp * wp * 4
    budget = vmem_limit // 2
    max_bt = max(1, (budget - working - out_buf) // max(1, per_b_in))
    bt = _pick_bt(b, max_bt)
    # TODO(synk): for very large H,W a single (1,C,H,W) block can exceed scoped VMEM
    # (threshold is half as large on v7x); that case needs an H-tiled grid with a
    # 4-row halo for the up/down shifts.

    # pltpu.roll (Mosaic rotate) needs the rolled array's last two dims to be
    # (8,128)-aligned; otherwise keep the proven one-hot shift matmuls.
    use_roll = (hp % 8 == 0) and (wp % 128 == 0)

    flops = int(b * (2 * c * h * w
                     + 2 * hp * h * w + 2 * hp * w * wp
                     + 4 * hp * hp * wp + 12 * hp * wp * wp
                     + 24 * hp * wp))
    bytes_accessed = int(2 * b * c * h * w * itemsize + b * hp * wp * 4)

    grid_spec = pltpu.PrefetchScalarGridSpec(
        num_scalar_prefetch=0,
        grid=(b // bt,),
        in_specs=[
            pl.BlockSpec((bt, c, h, w), lambda i: (i, 0, 0, 0)),   # org
            pl.BlockSpec((bt, c, h, w), lambda i: (i, 0, 0, 0)),   # enhance
        ],
        out_specs=pl.BlockSpec((bt, hp, wp), lambda i: (i, 0, 0)),
    )

    out = pl.pallas_call(
        functools.partial(_spa_kernel, use_roll=use_roll, unroll=unroll),
        out_shape=jax.ShapeDtypeStruct((b, hp, wp), jnp.float32),
        grid_spec=grid_spec,
        compiler_params=pltpu.CompilerParams(
            dimension_semantics=("parallel",),
            vmem_limit_bytes=int(vmem_limit)),
        cost_estimate=pl.CostEstimate(
            flops=flops, transcendentals=0, bytes_accessed=bytes_accessed),
    )(org, enhance)

    return out.reshape(b, 1, hp, wp)


# ---------------- pure-JAX reference (mirrors the PyTorch forward) ------------

def _l_spa_reference(org, enhance):
    def pool(x):
        bb, _, hh, ww = x.shape
        return x.reshape(bb, 1, hh // 4, 4, ww // 4, 4).mean(axis=(3, 5))

    om = jnp.mean(org, axis=1, keepdims=True)
    em = jnp.mean(enhance, axis=1, keepdims=True)
    op, ep = pool(om), pool(em)

    def dconv(x, oi, oj):
        xp = jnp.pad(x, ((0, 0), (0, 0), (1, 1), (1, 1)))
        hh, ww = x.shape[2], x.shape[3]
        nb = xp[:, :, 1 + oi:1 + oi + hh, 1 + oj:1 + oj + ww]
        return x - nb

    offsets = [(0, -1), (0, 1), (-1, 0), (1, 0), (-1, -1), (-1, 1), (1, -1), (1, 1)]
    e = jnp.zeros_like(op)
    for oi, oj in offsets:
        e = e + (dconv(op, oi, oj) - dconv(ep, oi, oj)) ** 2
    return e


if __name__ == "__main__":
    key = jax.random.PRNGKey(0)
    k1, k2 = jax.random.split(key)
    b, c, h, w = 8, 3, 32, 32
    org = jax.random.uniform(k1, (b, c, h, w), dtype=jnp.float32)
    enhance = jax.random.uniform(k2, (b, c, h, w), dtype=jnp.float32)

    out = l_spa(org, enhance)
    out = jax.block_until_ready(out)

    ref = _l_spa_reference(org, enhance)
    assert out.shape == (b, 1, h // 4, w // 4)
    assert jnp.allclose(out, ref, atol=1e-5, rtol=1e-4), "mismatch vs reference"

    print("KERNEL_OK")
</pallas_src>

<mosaic_0001>
module attributes {stable_mosaic.version = 11 : i64} {
  func.func @_spa_kernel(%arg0: i32, %arg1: memref<2x3x32x32xf32, #tpu.memory_space<vmem>>, %arg2: memref<2x3x32x32xf32, #tpu.memory_space<vmem>>, %arg3: memref<2x8x8xf32, #tpu.memory_space<vmem>>) attributes {dimension_semantics = [#tpu.dimension_semantics<parallel>], iteration_bounds = array<i64: 4>, scalar_prefetch = 0 : i64, scratch_operands = 0 : i64, tpu.core_type = #tpu.core_type<tc>, window_params = [{transform_indices = @transform_0, window_bounds = array<i64: 2, 3, 32, 32>}, {transform_indices = @transform_1, window_bounds = array<i64: 2, 3, 32, 32>}, {transform_indices = @transform_2, window_bounds = array<i64: 2, 8, 8>}]} {
    %0 = tpu.iota {dimensions = array<i32: 0>} : vector<8x32xi32>
    %1 = tpu.iota {dimensions = array<i32: 1>} : vector<8x32xi32>
    %c4_i32 = arith.constant 4 : i32
    %2 = vector.broadcast %c4_i32 : i32 to vector<8x32xi32>
    %3 = arith.muli %2, %0 : vector<8x32xi32>
    %4 = arith.cmpi sge, %1, %3 : vector<8x32xi32>
    %c4_i32_0 = arith.constant 4 : i32
    %5 = vector.broadcast %c4_i32_0 : i32 to vector<8x32xi32>
    %6 = arith.muli %5, %0 : vector<8x32xi32>
    %c4_i32_1 = arith.constant 4 : i32
    %7 = vector.broadcast %c4_i32_1 : i32 to vector<8x32xi32>
    %8 = arith.addi %6, %7 : vector<8x32xi32>
    %9 = arith.cmpi slt, %1, %8 : vector<8x32xi32>
    %10 = arith.andi %4, %9 : vector<8x32xi1>
    %cst = arith.constant 2.500000e-01 : f32
    %cst_2 = arith.constant 0.000000e+00 : f32
    %11 = vector.broadcast %cst : f32 to vector<8x32xf32>
    %12 = vector.broadcast %cst_2 : f32 to vector<8x32xf32>
    %13 = arith.select %10, %11, %12 : vector<8x32xi1>, vector<8x32xf32>
    %14 = tpu.iota {dimensions = array<i32: 0>} : vector<32x8xi32>
    %15 = tpu.iota {dimensions = array<i32: 1>} : vector<32x8xi32>
    %c4_i32_3 = arith.constant 4 : i32
    %16 = vector.broadcast %c4_i32_3 : i32 to vector<32x8xi32>
    %17 = arith.muli %16, %15 : vector<32x8xi32>
    %18 = arith.cmpi sge, %14, %17 : vector<32x8xi32>
    %c4_i32_4 = arith.constant 4 : i32
    %19 = vector.broadcast %c4_i32_4 : i32 to vector<32x8xi32>
    %20 = arith.muli %19, %15 : vector<32x8xi32>
    %c4_i32_5 = arith.constant 4 : i32
    %21 = vector.broadcast %c4_i32_5 : i32 to vector<32x8xi32>
    %22 = arith.addi %20, %21 : vector<32x8xi32>
    %23 = arith.cmpi slt, %14, %22 : vector<32x8xi32>
    %24 = arith.andi %18, %23 : vector<32x8xi1>
    %cst_6 = arith.constant 2.500000e-01 : f32
    %cst_7 = arith.constant 0.000000e+00 : f32
    %25 = vector.broadcast %cst_6 : f32 to vector<32x8xf32>
    %26 = vector.broadcast %cst_7 : f32 to vector<32x8xf32>
    %27 = arith.select %24, %25, %26 : vector<32x8xi1>, vector<32x8xf32>
    %28 = tpu.iota {dimensions = array<i32: 0>} : vector<8x8xi32>
    %29 = tpu.iota {dimensions = array<i32: 1>} : vector<8x8xi32>
    %c-1_i32 = arith.constant -1 : i32
    %30 = vector.broadcast %c-1_i32 : i32 to vector<8x8xi32>
    %31 = arith.addi %28, %30 : vector<8x8xi32>
    %32 = arith.cmpi eq, %29, %31 : vector<8x8xi32>
    %cst_8 = arith.constant 1.000000e+00 : f32
    %cst_9 = arith.constant 0.000000e+00 : f32
    %33 = vector.broadcast %cst_8 : f32 to vector<8x8xf32>
    %34 = vector.broadcast %cst_9 : f32 to vector<8x8xf32>
    %35 = arith.select %32, %33, %34 : vector<8x8xi1>, vector<8x8xf32>
    %36 = tpu.iota {dimensions = array<i32: 0>} : vector<8x8xi32>
    %37 = tpu.iota {dimensions = array<i32: 1>} : vector<8x8xi32>
    %c1_i32 = arith.constant 1 : i32
    %38 = vector.broadcast %c1_i32 : i32 to vector<8x8xi32>
    %39 = arith.addi %36, %38 : vector<8x8xi32>
    %40 = arith.cmpi eq, %37, %39 : vector<8x8xi32>
    %cst_10 = arith.constant 1.000000e+00 : f32
    %cst_11 = arith.constant 0.000000e+00 : f32
    %41 = vector.broadcast %cst_10 : f32 to vector<8x8xf32>
    %42 = vector.broadcast %cst_11 : f32 to vector<8x8xf32>
    %43 = arith.select %40, %41, %42 : vector<8x8xi1>, vector<8x8xf32>
    %44 = tpu.iota {dimensions = array<i32: 0>} : vector<8x8xi32>
    %45 = tpu.iota {dimensions = array<i32: 1>} : vector<8x8xi32>
    %c-1_i32_12 = arith.constant -1 : i32
    %46 = vector.broadcast %c-1_i32_12 : i32 to vector<8x8xi32>
    %47 = arith.addi %45, %46 : vector<8x8xi32>
    %48 = arith.cmpi eq, %44, %47 : vector<8x8xi32>
    %cst_13 = arith.constant 1.000000e+00 : f32
    %cst_14 = arith.constant 0.000000e+00 : f32
    %49 = vector.broadcast %cst_13 : f32 to vector<8x8xf32>
    %50 = vector.broadcast %cst_14 : f32 to vector<8x8xf32>
    %51 = arith.select %48, %49, %50 : vector<8x8xi1>, vector<8x8xf32>
    %52 = tpu.iota {dimensions = array<i32: 0>} : vector<8x8xi32>
    %53 = tpu.iota {dimensions = array<i32: 1>} : vector<8x8xi32>
    %c1_i32_15 = arith.constant 1 : i32
    %54 = vector.broadcast %c1_i32_15 : i32 to vector<8x8xi32>
    %55 = arith.addi %53, %54 : vector<8x8xi32>
    %56 = arith.cmpi eq, %52, %55 : vector<8x8xi32>
    %cst_16 = arith.constant 1.000000e+00 : f32
    %cst_17 = arith.constant 0.000000e+00 : f32
    %57 = vector.broadcast %cst_16 : f32 to vector<8x8xf32>
    %58 = vector.broadcast %cst_17 : f32 to vector<8x8xf32>
    %59 = arith.select %56, %57, %58 : vector<8x8xi1>, vector<8x8xf32>
    %c0_i32 = arith.constant 0 : i32
    %60 = arith.index_cast %c0_i32 : i32 to index
    %c0 = arith.constant 0 : index
    %c0_18 = arith.constant 0 : index
    %c0_19 = arith.constant 0 : index
    %61 = vector.load %arg1[%60, %c0, %c0_18, %c0_19] : memref<2x3x32x32xf32, #tpu.memory_space<vmem>>, vector<1x3x32x32xf32>
    %62 = vector.shape_cast %61 : vector<1x3x32x32xf32> to vector<3x32x32xf32>
    %63 = arith.index_cast %c0_i32 : i32 to index
    %c0_20 = arith.constant 0 : index
    %c0_21 = arith.constant 0 : index
    %c0_22 = arith.constant 0 : index
    %64 = vector.load %arg2[%63, %c0_20, %c0_21, %c0_22] : memref<2x3x32x32xf32, #tpu.memory_space<vmem>>, vector<1x3x32x32xf32>
    %65 = vector.shape_cast %64 : vector<1x3x32x32xf32> to vector<3x32x32xf32>
    %66 = arith.subf %62, %65 : vector<3x32x32xf32>
    %cst_23 = arith.constant dense<0.000000e+00> : vector<32x32xf32>
    %67 = vector.multi_reduction <add>, %66, %cst_23 [0] : vector<3x32x32xf32> to vector<32x32xf32>
    %cst_24 = arith.constant 3.000000e+00 : f32
    %68 = vector.broadcast %cst_24 : f32 to vector<32x32xf32>
    %69 = arith.divf %67, %68 : vector<32x32xf32>
    %cst_25 = arith.constant dense<0.000000e+00> : vector<8x32xf32>
    %70 = tpu.matmul %13, %69, %cst_25 {dimension_numbers = #tpu.dot_dimension_numbers<[1], [0], [0], [1], [0, 0, 1, 1], [], []>} : vector<8x32xf32>, vector<32x32xf32>, vector<8x32xf32> -> vector<8x32xf32>
    %cst_26 = arith.constant dense<0.000000e+00> : vector<8x8xf32>
    %71 = tpu.matmul %70, %27, %cst_26 {dimension_numbers = #tpu.dot_dimension_numbers<[1], [0], [0], [1], [0, 0, 1, 1], [], []>} : vector<8x32xf32>, vector<32x8xf32>, vector<8x8xf32> -> vector<8x8xf32>
    %cst_27 = arith.constant dense<0.000000e+00> : vector<8x8xf32>
    %72 = tpu.matmul %35, %71, %cst_27 {dimension_numbers = #tpu.dot_dimension_numbers<[1], [0], [0], [1], [0, 0, 1, 1], [], []>} : vector<8x8xf32>, vector<8x8xf32>, vector<8x8xf32> -> vector<8x8xf32>
    %cst_28 = arith.constant dense<0.000000e+00> : vector<8x8xf32>
    %73 = tpu.matmul %43, %71, %cst_28 {dimension_numbers = #tpu.dot_dimension_numbers<[1], [0], [0], [1], [0, 0, 1, 1], [], []>} : vector<8x8xf32>, vector<8x8xf32>, vector<8x8xf32> -> vector<8x8xf32>
    %cst_29 = arith.constant dense<0.000000e+00> : vector<8x8xf32>
    %74 = tpu.matmul %71, %51, %cst_29 {dimension_numbers = #tpu.dot_dimension_numbers<[1], [0], [0], [1], [0, 0, 1, 1], [], []>} : vector<8x8xf32>, vector<8x8xf32>, vector<8x8xf32> -> vector<8x8xf32>
    %75 = arith.subf %71, %74 : vector<8x8xf32>
    %76 = arith.mulf %75, %75 : vector<8x8xf32>
    %cst_30 = arith.constant dense<0.000000e+00> : vector<8x8xf32>
    %77 = tpu.matmul %71, %59, %cst_30 {dimension_numbers = #tpu.dot_dimension_numbers<[1], [0], [0], [1], [0, 0, 1, 1], [], []>} : vector<8x8xf32>, vector<8x8xf32>, vector<8x8xf32> -> vector<8x8xf32>
    %78 = arith.subf %71, %77 : vector<8x8xf32>
    %79 = arith.mulf %78, %78 : vector<8x8xf32>
    %80 = arith.addf %76, %79 : vector<8x8xf32>
    %81 = arith.subf %71, %72 : vector<8x8xf32>
    %82 = arith.mulf %81, %81 : vector<8x8xf32>
    %83 = arith.addf %80, %82 : vector<8x8xf32>
    %84 = arith.subf %71, %73 : vector<8x8xf32>
    %85 = arith.mulf %84, %84 : vector<8x8xf32>
    %86 = arith.addf %83, %85 : vector<8x8xf32>
    %cst_31 = arith.constant dense<0.000000e+00> : vector<8x8xf32>
    %87 = tpu.matmul %72, %51, %cst_31 {dimension_numbers = #tpu.dot_dimension_numbers<[1], [0], [0], [1], [0, 0, 1, 1], [], []>} : vector<8x8xf32>, vector<8x8xf32>, vector<8x8xf32> -> vector<8x8xf32>
    %88 = arith.subf %71, %87 : vector<8x8xf32>
    %89 = arith.mulf %88, %88 : vector<8x8xf32>
    %90 = arith.addf %86, %89 : vector<8x8xf32>
    %cst_32 = arith.constant dense<0.000000e+00> : vector<8x8xf32>
    %91 = tpu.matmul %72, %59, %cst_32 {dimension_numbers = #tpu.dot_dimension_numbers<[1], [0], [0], [1], [0, 0, 1, 1], [], []>} : vector<8x8xf32>, vector<8x8xf32>, vector<8x8xf32> -> vector<8x8xf32>
    %92 = arith.subf %71, %91 : vector<8x8xf32>
    %93 = arith.mulf %92, %92 : vector<8x8xf32>
    %94 = arith.addf %90, %93 : vector<8x8xf32>
    %cst_33 = arith.constant dense<0.000000e+00> : vector<8x8xf32>
    %95 = tpu.matmul %73, %51, %cst_33 {dimension_numbers = #tpu.dot_dimension_numbers<[1], [0], [0], [1], [0, 0, 1, 1], [], []>} : vector<8x8xf32>, vector<8x8xf32>, vector<8x8xf32> -> vector<8x8xf32>
    %96 = arith.subf %71, %95 : vector<8x8xf32>
    %97 = arith.mulf %96, %96 : vector<8x8xf32>
    %98 = arith.addf %94, %97 : vector<8x8xf32>
    %cst_34 = arith.constant dense<0.000000e+00> : vector<8x8xf32>
    %99 = tpu.matmul %73, %59, %cst_34 {dimension_numbers = #tpu.dot_dimension_numbers<[1], [0], [0], [1], [0, 0, 1, 1], [], []>} : vector<8x8xf32>, vector<8x8xf32>, vector<8x8xf32> -> vector<8x8xf32>
    %100 = arith.subf %71, %99 : vector<8x8xf32>
    %101 = arith.mulf %100, %100 : vector<8x8xf32>
    %102 = arith.addf %98, %101 : vector<8x8xf32>
    %103 = arith.index_cast %c0_i32 : i32 to index
    %c0_35 = arith.constant 0 : index
    %c0_36 = arith.constant 0 : index
    %104 = vector.load %arg3[%103, %c0_35, %c0_36] : memref<2x8x8xf32, #tpu.memory_space<vmem>>, vector<1x8x8xf32>
    %105 = vector.shape_cast %104 : vector<1x8x8xf32> to vector<8x8xf32>
    %106 = vector.shape_cast %102 : vector<8x8xf32> to vector<1x8x8xf32>
    tpu.vector_store %arg3[%103, %c0_35, %c0_36], %106 {strides = array<i32>} : memref<2x8x8xf32, #tpu.memory_space<vmem>>, vector<1x8x8xf32>,
    %c1_i32_37 = arith.constant 1 : i32
    %107 = arith.index_cast %c1_i32_37 : i32 to index
    %c0_38 = arith.constant 0 : index
    %c0_39 = arith.constant 0 : index
    %c0_40 = arith.constant 0 : index
    %108 = vector.load %arg1[%107, %c0_38, %c0_39, %c0_40] : memref<2x3x32x32xf32, #tpu.memory_space<vmem>>, vector<1x3x32x32xf32>
    %109 = vector.shape_cast %108 : vector<1x3x32x32xf32> to vector<3x32x32xf32>
    %110 = arith.index_cast %c1_i32_37 : i32 to index
    %c0_41 = arith.constant 0 : index
    %c0_42 = arith.constant 0 : index
    %c0_43 = arith.constant 0 : index
    %111 = vector.load %arg2[%110, %c0_41, %c0_42, %c0_43] : memref<2x3x32x32xf32, #tpu.memory_space<vmem>>, vector<1x3x32x32xf32>
    %112 = vector.shape_cast %111 : vector<1x3x32x32xf32> to vector<3x32x32xf32>
    %113 = arith.subf %109, %112 : vector<3x32x32xf32>
    %cst_44 = arith.constant dense<0.000000e+00> : vector<32x32xf32>
    %114 = vector.multi_reduction <add>, %113, %cst_44 [0] : vector<3x32x32xf32> to vector<32x32xf32>
    %cst_45 = arith.constant 3.000000e+00 : f32
    %115 = vector.broadcast %cst_45 : f32 to vector<32x32xf32>
    %116 = arith.divf %114, %115 : vector<32x32xf32>
    %cst_46 = arith.constant dense<0.000000e+00> : vector<8x32xf32>
    %117 = tpu.matmul %13, %116, %cst_46 {dimension_numbers = #tpu.dot_dimension_numbers<[1], [0], [0], [1], [0, 0, 1, 1], [], []>} : vector<8x32xf32>, vector<32x32xf32>, vector<8x32xf32> -> vector<8x32xf32>
    %cst_47 = arith.constant dense<0.000000e+00> : vector<8x8xf32>
    %118 = tpu.matmul %117, %27, %cst_47 {dimension_numbers = #tpu.dot_dimension_numbers<[1], [0], [0], [1], [0, 0, 1, 1], [], []>} : vector<8x32xf32>, vector<32x8xf32>, vector<8x8xf32> -> vector<8x8xf32>
    %cst_48 = arith.constant dense<0.000000e+00> : vector<8x8xf32>
    %119 = tpu.matmul %35, %118, %cst_48 {dimension_numbers = #tpu.dot_dimension_numbers<[1], [0], [0], [1], [0, 0, 1, 1], [], []>} : vector<8x8xf32>, vector<8x8xf32>, vector<8x8xf32> -> vector<8x8xf32>
    %cst_49 = arith.constant dense<0.000000e+00> : vector<8x8xf32>
    %120 = tpu.matmul %43, %118, %cst_49 {dimension_numbers = #tpu.dot_dimension_numbers<[1], [0], [0], [1], [0, 0, 1, 1], [], []>} : vector<8x8xf32>, vector<8x8xf32>, vector<8x8xf32> -> vector<8x8xf32>
    %cst_50 = arith.constant dense<0.000000e+00> : vector<8x8xf32>
    %121 = tpu.matmul %118, %51, %cst_50 {dimension_numbers = #tpu.dot_dimension_numbers<[1], [0], [0], [1], [0, 0, 1, 1], [], []>} : vector<8x8xf32>, vector<8x8xf32>, vector<8x8xf32> -> vector<8x8xf32>
    %122 = arith.subf %118, %121 : vector<8x8xf32>
    %123 = arith.mulf %122, %122 : vector<8x8xf32>
    %cst_51 = arith.constant dense<0.000000e+00> : vector<8x8xf32>
    %124 = tpu.matmul %118, %59, %cst_51 {dimension_numbers = #tpu.dot_dimension_numbers<[1], [0], [0], [1], [0, 0, 1, 1], [], []>} : vector<8x8xf32>, vector<8x8xf32>, vector<8x8xf32> -> vector<8x8xf32>
    %125 = arith.subf %118, %124 : vector<8x8xf32>
    %126 = arith.mulf %125, %125 : vector<8x8xf32>
    %127 = arith.addf %123, %126 : vector<8x8xf32>
    %128 = arith.subf %118, %119 : vector<8x8xf32>
    %129 = arith.mulf %128, %128 : vector<8x8xf32>
    %130 = arith.addf %127, %129 : vector<8x8xf32>
    %131 = arith.subf %118, %120 : vector<8x8xf32>
    %132 = arith.mulf %131, %131 : vector<8x8xf32>
    %133 = arith.addf %130, %132 : vector<8x8xf32>
    %cst_52 = arith.constant dense<0.000000e+00> : vector<8x8xf32>
    %134 = tpu.matmul %119, %51, %cst_52 {dimension_numbers = #tpu.dot_dimension_numbers<[1], [0], [0], [1], [0, 0, 1, 1], [], []>} : vector<8x8xf32>, vector<8x8xf32>, vector<8x8xf32> -> vector<8x8xf32>
    %135 = arith.subf %118, %134 : vector<8x8xf32>
    %136 = arith.mulf %135, %135 : vector<8x8xf32>
    %137 = arith.addf %133, %136 : vector<8x8xf32>
    %cst_53 = arith.constant dense<0.000000e+00> : vector<8x8xf32>
    %138 = tpu.matmul %119, %59, %cst_53 {dimension_numbers = #tpu.dot_dimension_numbers<[1], [0], [0], [1], [0, 0, 1, 1], [], []>} : vector<8x8xf32>, vector<8x8xf32>, vector<8x8xf32> -> vector<8x8xf32>
    %139 = arith.subf %118, %138 : vector<8x8xf32>
    %140 = arith.mulf %139, %139 : vector<8x8xf32>
    %141 = arith.addf %137, %140 : vector<8x8xf32>
    %cst_54 = arith.constant dense<0.000000e+00> : vector<8x8xf32>
    %142 = tpu.matmul %120, %51, %cst_54 {dimension_numbers = #tpu.dot_dimension_numbers<[1], [0], [0], [1], [0, 0, 1, 1], [], []>} : vector<8x8xf32>, vector<8x8xf32>, vector<8x8xf32> -> vector<8x8xf32>
    %143 = arith.subf %118, %142 : vector<8x8xf32>
    %144 = arith.mulf %143, %143 : vector<8x8xf32>
    %145 = arith.addf %141, %144 : vector<8x8xf32>
    %cst_55 = arith.constant dense<0.000000e+00> : vector<8x8xf32>
    %146 = tpu.matmul %120, %59, %cst_55 {dimension_numbers = #tpu.dot_dimension_numbers<[1], [0], [0], [1], [0, 0, 1, 1], [], []>} : vector<8x8xf32>, vector<8x8xf32>, vector<8x8xf32> -> vector<8x8xf32>
    %147 = arith.subf %118, %146 : vector<8x8xf32>
    %148 = arith.mulf %147, %147 : vector<8x8xf32>
    %149 = arith.addf %145, %148 : vector<8x8xf32>
    %150 = arith.index_cast %c1_i32_37 : i32 to index
    %c0_56 = arith.constant 0 : index
    %c0_57 = arith.constant 0 : index
    %151 = vector.load %arg3[%150, %c0_56, %c0_57] : memref<2x8x8xf32, #tpu.memory_space<vmem>>, vector<1x8x8xf32>
    %152 = vector.shape_cast %151 : vector<1x8x8xf32> to vector<8x8xf32>
    %153 = vector.shape_cast %149 : vector<8x8xf32> to vector<1x8x8xf32>
    tpu.vector_store %arg3[%150, %c0_56, %c0_57], %153 {strides = array<i32>} : memref<2x8x8xf32, #tpu.memory_space<vmem>>, vector<1x8x8xf32>,
    %c2_i32 = arith.constant 2 : i32
    return
  }
  func.func @transform_0(%arg0: i32) -> (i32, i32, i32, i32) {
    %c0_i32 = arith.constant 0 : i32
    %c0_i32_0 = arith.constant 0 : i32
    %c0_i32_1 = arith.constant 0 : i32
    %c0_i32_2 = arith.constant 0 : i32
    return %arg0, %c0_i32, %c0_i32_0, %c0_i32_1 : i32, i32, i32, i32
  }
  func.func @transform_1(%arg0: i32) -> (i32, i32, i32, i32) {
    %c0_i32 = arith.constant 0 : i32
    %c0_i32_0 = arith.constant 0 : i32
    %c0_i32_1 = arith.constant 0 : i32
    %c0_i32_2 = arith.constant 0 : i32
    return %arg0, %c0_i32, %c0_i32_0, %c0_i32_1 : i32, i32, i32, i32
  }
  func.func @transform_2(%arg0: i32) -> (i32, i32, i32) {
    %c0_i32 = arith.constant 0 : i32
    %c0_i32_0 = arith.constant 0 : i32
    %c0_i32_1 = arith.constant 0 : i32
    return %arg0, %c0_i32, %c0_i32_0 : i32, i32, i32
  }
}

</mosaic_0001>

<bundles_post_ra>
// kernel: tpu_custom_call.1
= control target key start
LH: loop header
LB: loop body
LE: loop exit
PB: predicated region body
PF: predicated region fallthrough
CT: control target
= control target key end

     0   :  { %7 = vsyncpa [#allocation3], 0  ;;  %s1720_s0 = inlined_call_operand.hbm [shape: f32[8,3,32,32], index: 0, kind: input, shape index: {}]   ;;  %s1721_s1 = inlined_call_operand.hbm [shape: f32[8,3,32,32], index: 1, kind: input, shape index: {}]   ;;  %s1722_s2 = inlined_call_operand.hbm [shape: f32[8,8,8], index: 2, kind: output, shape index: {}]  }
   0x1   :  { %9 = vsyncpa [#allocation3 + $0x1], 0 }
   0x2   :  { %10 = vsyncpa [#allocation6], 0 }
   0x3   :  { %12 = vsyncpa [#allocation6 + $0x1], 0 }
   0x4   :  { %13 = vsyncpa [#allocation4], 0 }
   0x5   :  { %15 = vsyncpa [#allocation4 + $0x1], 0  ;;  %s1282_s9 = smov 0   ;;  %s1284_s10 = smov 0  }
   0x6   :  { %s1286_s11 = smov 0   ;;  %s1288_s12 = smov 0  }
   0x7 LB: > { %s1303_s13 = sadd.s32 4294967295, %s1257_s12   ;;  %s979_s14 = sadd.s32 4294967294, %s1257_s12   ;;  %s1257_s12 = sphi %s1288_s12, %s1743_s12   ;;  %s1253_s11 = sphi %s1286_s11, %s1742_s11   ;;  %s1249_s10 = sphi %s1284_s10, %s1741_s10   ;;  %s1245_s9 = sphi %s1282_s9, %s1740_s9  }
   0x8   : > { %s1307_s15 = sadd.s32 1, %s1257_s12   ;;  %s28_s16 = sadd.s32 1, %s1253_s11 }
   0x9   : > { %s25_s17 = ssub.s32 %s1257_s12, %s1307_s15  ;;  %p35_p0 = scmp.ne.s32.totalorder %s1253_s11, %s1249_s10 }
   0xa   : > { %p26_p1 = scmp.eq.s32.totalorder %s25_s17, 0  ;;  %p36_p2 = scmp.eq.s32.totalorder %s1257_s12, 0 }
   0xb   : > { %p41_p3 = scmp.ne.s32.totalorder %s1249_s10, %s1245_s9  ;;  %p42_p4 = scmp.eq.s32.totalorder %s1303_s13, 0 }
   0xc   : > { %s1319_s18 = scalar_select %p26_p1, %s1253_s11, %s28_s16  }
   0xd   : > { %p37_p5 = por %p36_p2, %p35_p0  ;;  %p1321_p6 = por %p42_p4, %p41_p3 }
   0xe   : > { %p91_p7 = scmp.eq.s32.totalorder %s1303_s13, 3  ;;  %p97_p8 = scmp.eq.s32.totalorder %s979_s14, 3 }
   0xf   : > { %p1083_p9 = scmp.lt.s32.totalorder %s1257_s12, 4  ;;  %s1336_s22 = sand.u32 1, %s1253_s11  }
  0x10   : > { %p1327_p10 = por %p91_p7, %p35_p0  ;;  %p1331_p11 = por %p97_p8, %p41_p3 }
  0x11   : > { %s1062_s23 = smul.u32 192, %s1257_s12  ;;  %p1345_p12 = pnand %p1083_p9, %p37_p5 }
  0x12   : > { %s1061_s24 = smul.u32 192, %s1336_s22  ;;  %s118_s4 = scalar_lea.sflag [#allocation3], %s1336_s22 }
  0x13   : > { %s127_s27 = scalar_lea.hbm %s1720_s0, %s1062_s23  ;;  %p1131_p0 = pneg %p1345_p12 }
  0x14   : > { %s128_s29 = sshll.u32 %s127_s27, 4  ;;  %s121_s30 = scalar_lea.vmem [#allocation2], %s1061_s24  ;;  %s129_s29 = int_to_ptr.hbm [resolvable:$true] %s128_s29 }
  0x15   : > { %s130_s3 = sshll.u32 %s121_s30, 4  ;;  %s1127_s5 = sshra.s32 %s129_s29, 4  ;;  %s131_s3 = int_to_ptr.vmem [resolvable:$true] %s130_s3  ;;  %s1128_s5 = int_to_ptr.hbm [resolvable:$true] %s1127_s5 }
  0x16   : > { %s1129_s6 = scalar_lea.hbm %s1128_s5, 192  ;;  %s1134_s14 = scalar_lea.hbm %s1720_s0, 768 }
  0x17   : > { %p1130_p13 = scmp.ne.s32.totalorder %s1128_s5, %s1129_s6  ;;  %p1135_p3 = scmp.lt.s32.totalorder %s1128_s5, %s1720_s0 }
  0x18   : > { %p1136_p4 = scmp.lt.s32.totalorder %s1134_s14, %s1129_s6 }
  0x19   : > { %p1132_p1 = pnand %p1131_p0, %p1130_p13 }
  0x1a   : > { %p1137_p5 = por %p1136_p4, %p1135_p3 }
  0x1b   : > { %p1133_p2 = pneg %p1132_p1 }
  0x1d   : > { %p1138_p7 = pnand %p1137_p5, %p1133_p2 }
  0x1f   : > { %1141 = shalt.err (!%p1138_p7)
}
  0x20   : > { %s1259_s25 = smov 128   ;;  %s1260_s26 = smov 8  }
  0x21   : > { %1075 = dma.hbm_to_vmem [thread:$0]  (!%p1345_p12), %s129_s29, 3072, %s131_s3, %s118_s4, %s1259_s25, %s1259_s25, %s1260_s26  }
  0x22   : > { %p988_p8 = scmp.ge.s32.totalorder %s1257_s12, 1  ;;  %p161_p9 = scmp.lt.s32.totalorder %s1257_s12, 5 }
  0x23   : > { %s150_s6 = scalar_lea.hbm %s1721_s1, %s1062_s23  ;;  %s144_s8 = scalar_lea.vmem [#allocation5], %s1061_s24 }
  0x24   : > { %p1367_p13 = pnand %p988_p8, %p161_p9  ;;  %s151_s7 = sshll.u32 %s150_s6, 4  ;;  %s152_s7 = int_to_ptr.hbm [resolvable:$true] %s151_s7 }
  0x25   : > { %s153_s14 = sshll.u32 %s144_s8, 4  ;;  %s141_s16 = scalar_lea.sflag [#allocation6], %s1336_s22  ;;  %s154_s14 = int_to_ptr.vmem [resolvable:$true] %s153_s14 }
  0x26   : > { %s1157_s17 = sshra.s32 %s152_s7, 4  ;;  %s1164_s30 = scalar_lea.hbm %s1721_s1, 768  ;;  %s1158_s17 = int_to_ptr.hbm [resolvable:$true] %s1157_s17 }
  0x27   : > { %s1159_s29 = scalar_lea.hbm %s1158_s17, 192  ;;  %p1165_p4 = scmp.lt.s32.totalorder %s1158_s17, %s1721_s1 }
  0x28   : > { %p1160_p1 = scmp.ne.s32.totalorder %s1158_s17, %s1159_s29  ;;  %p1166_p5 = scmp.lt.s32.totalorder %s1164_s30, %s1159_s29 }
  0x2a   : > { %p1162_p2 = pnand %p1160_p1, %p1131_p0  ;;  %p1167_p7 = por %p1166_p5, %p1165_p4 }
  0x2c   : > { %p1163_p3 = pneg %p1162_p2 }
  0x2e   : > { %p1168_p8 = pnand %p1167_p7, %p1163_p3 }
  0x30   : > { %1171 = shalt.err (!%p1168_p8)
}
  0x31   : > { %1078 = dma.hbm_to_vmem [thread:$0]  (!%p1345_p12), %s152_s7, 3072, %s154_s14, %s141_s16, %s1259_s25, %s1259_s25, %s1260_s26  }
  0x32   : > { %165 = sbr.rel (%p1367_p13) target bundleno = 1011 (0x3f3), region = 28  ;;  %s1393_s22 = sand.u32 (!%p1367_p13), 1, %s1249_s10  }
  0x33   : > { %s1065_s24 = smul.u32 (!%p1367_p13), 192, %s1393_s22  ;;  %s168_s6 = scalar_lea.sflag (!%p1367_p13), [#allocation3], %s1393_s22 }
  0x35   : > { %s1397_s8 = scalar_lea.vmem (!%p1367_p13), [#allocation2], %s1065_s24 }
  0x37   : > { %1232 = dma.done.wait (%p1321_p6), %s168_s6, 3072  }
  0x38   : > { %1234 = vsyncadd (%p1321_p6), %s168_s6, 4294964224  ;;  %s178_s28 = scalar_lea.sflag [#allocation6], %s1393_s22  ;;  %s1404_s25 = scalar_lea.vmem [#allocation5], %s1065_s24 }
  0x39   : > { %1236 = dma.done.wait (%p1321_p6), %s178_s28, 3072  }
  0x3a   : > { %1238 = vsyncadd (%p1321_p6), %s178_s28, 4294964224  ;;  %v211_v0 = vlaneseq  ;;  %v1261_v1 = vmov 3.0   ;;  %v257_v11 = vld [vmem:[%s1397_s8 + $0x18] sm:$0xff]  ;;  %vm290_vm0 = vcmask 261120   ;;  %v256_v22 = vld [vmem:[%s1397_s8 + $0x10] sm:$0xff]  ;;  %s989_s19 = sshll.u32 %s1393_s22, 4 }
  0x3b   : > { %1125 = vrcp.f32 %v1261_v1  ;;  %v261_v12 = vld [vmem:[%s1397_s8 + $0x38] sm:$0xff]  ;;  %v260_v23 = vld [vmem:[%s1397_s8 + $0x30] sm:$0xff]  ;;  %v255_v34 = vld [vmem:[%s1397_s8 + $0x8] sm:$0xff]  ;;  %s1665_s26 = scalar_lea.vmem [#allocation7], %s989_s19  ;;  %s1060_s27 = sshll.u32 %s1303_s13, 4 }
  0x3c   : > { %v1410_v2 = vshrl.u32 %v211_v0, 7  ;;  %v1412_v3 = vand.u32 127, %v211_v0  ;;  %v265_v13 = vld [vmem:[%s1397_s8 + $0x58] sm:$0xff]  ;;  %v264_v24 = vld [vmem:[%s1397_s8 + $0x50] sm:$0xff]  ;;  %v259_v35 = vld [vmem:[%s1397_s8 + $0x28] sm:$0xff]  ;;  %s879_s16 = scalar_lea.hbm %s1722_s2, %s1060_s27  ;;  %s880_s17 = sshll.u32 %s1665_s26, 4  ;;  %s881_s17 = int_to_ptr.vmem [resolvable:$true] %s880_s17 }
  0x3d   : > { %v269_v15 = vld [vmem:[%s1404_s25 + $0x18] sm:$0xff]  ;;  %v268_v27 = vld [vmem:[%s1404_s25 + $0x10] sm:$0xff]  ;;  %v263_v36 = vld [vmem:[%s1397_s8 + $0x48] sm:$0xff]  ;;  %s882_s29 = sshll.u32 %s879_s16, 4  ;;  %s868_s13 = scalar_lea.sflag [#allocation4], %s1393_s22  ;;  %s883_s29 = int_to_ptr.hbm [resolvable:$true] %s882_s29 }
  0x3e   : > { %v215_v4 = vmul.u32 4, %v1410_v2  ;;  %v1416_v5 = vadd.s32 24, %v1410_v2  ;;  %v1419_v6 = vmul.u32 4, %v1412_v3  ;;  %v1422_v7 = vadd.s32 16, %v1410_v2  ;;  %v273_v16 = vld [vmem:[%s1404_s25 + $0x38] sm:$0xff]  ;;  %v272_v28 = vld [vmem:[%s1404_s25 + $0x30] sm:$0xff] }
  0x3f   : > { %v1425_v8 = vadd.s32 8, %v1410_v2  ;;  %v277_v17 = vld [vmem:[%s1404_s25 + $0x58] sm:$0xff]  ;;  %v281_v19 = vsub.f32 %v257_v11, %v269_v15  ;;  %v285_v20 = vsub.f32 %v261_v12, %v273_v16  ;;  %v276_v29 = vld [vmem:[%s1404_s25 + $0x50] sm:$0xff]  ;;  %v280_v33 = vsub.f32 %v256_v22, %v268_v27  ;;  %v267_v41 = vld [vmem:[%s1404_s25 + $0x8] sm:$0xff]  ;;  %s1201_s3 = sshra.s32 %s883_s29, 4  ;;  %s1207_s5 = scalar_lea.hbm %s1722_s2, 64  ;;  %s1202_s3 = int_to_ptr.hbm [resolvable:$true] %s1201_s3 }
  0x40   : > { %v1428_v9 = vadd.s32 4, %v1419_v6  ;;  %v1433_v14 = vadd.s32 4, %v215_v4  ;;  %vm228_vm1 = vcmp.ge.s32.totalorder %v1416_v5, %v1419_v6  ;;  %vm227_vm2 = vcmp.ge.s32.totalorder %v1422_v7, %v1419_v6  ;;  %v271_v42 = vld [vmem:[%s1404_s25 + $0x28] sm:$0xff]  ;;  %v254_v48 = vld [vmem:[%s1397_s8] sm:$0xff]  ;;  %s1203_s4 = scalar_lea.hbm %s1202_s3, 16  ;;  %p1208_p9 = scmp.lt.s32.totalorder %s1202_s3, %s1722_s2 }
  0x41   : > { %v1126_v10 = vpop.eup %1125  ;;  %vm226_vm3 = vcmp.ge.s32.totalorder %v1425_v8, %v1419_v6  ;;  %v289_v21 = vsub.f32 %v265_v13, %v277_v17  ;;  %vm1448_vm5 = vcmp.ge.s32.totalorder %v1412_v3, %v215_v4  ;;  %v306_v30 = vsel %vm290_vm0, %v281_v19, 0.0  ;;  %v275_v43 = vld [vmem:[%s1404_s25 + $0x48] sm:$0xff]  ;;  %v258_v49 = vld [vmem:[%s1397_s8 + $0x20] sm:$0xff]  ;;  %p1204_p6 = scmp.ne.s32.totalorder %s1202_s3, %s1203_s4  ;;  %p1209_p13 = scmp.lt.s32.totalorder %s1207_s5, %s1203_s4 }
  0x42   : > { %v312_v18 = vmul.f32 3.0, %v1126_v10  ;;  %vm316_vm4 = vweird.f32 %v1126_v10  ;;  %vm233_vm6 = vcmp.lt.s32.totalorder %v1416_v5, %v1428_v9  ;;  %vm232_vm7 = vcmp.lt.s32.totalorder %v1422_v7, %v1428_v9  ;;  %v262_v50 = vld [vmem:[%s1397_s8 + $0x40] sm:$0xff] }
  0x43   : > { %vm231_vm8 = vcmp.lt.s32.totalorder %v1425_v8, %v1428_v9  ;;  %v307_v31 = vsel %vm290_vm0, %v285_v20, 0.0  ;;  %v309_v32 = vsel %vm290_vm0, %v289_v21, 0.0  ;;  %v284_v39 = vsub.f32 %v260_v23, %v272_v28  ;;  %v266_v55 = vld [vmem:[%s1404_s25] sm:$0xff]  ;;  %vm1491_vm9 = vmand %vm228_vm1, %vm233_vm6  ;;  %p1205_p12 = pnand %p1204_p6, %p1327_p10  ;;  %p1210_p1 = por %p1209_p13, %p1208_p9 }
  0x44   : > { %v313_v26 = vsub.f32 1.0, %v312_v18  ;;  %v308_v37 = vadd.f32 %v307_v31, %v306_v30  ;;  %v288_v40 = vsub.f32 %v264_v24, %v276_v29  ;;  %v301_v44 = vsel %vm290_vm0, %v280_v33, 0.0  ;;  %v270_v56 = vld [vmem:[%s1404_s25 + $0x20] sm:$0xff]  ;;  %vm1506_vm11 = vmand %vm227_vm2, %vm232_vm7  ;;  %v1025_v33 = vld [vmem:[%s1404_s25 + $0x78] sm:$0xff] }
  0x45   : > { %v279_v45 = vsub.f32 %v255_v34, %v267_v41  ;;  %v283_v46 = vsub.f32 %v259_v35, %v271_v42  ;;  %v287_v47 = vsub.f32 %v263_v36, %v275_v43  ;;  %v302_v53 = vsel %vm290_vm0, %v284_v39, 0.0  ;;  %v274_v57 = vld [vmem:[%s1404_s25 + $0x40] sm:$0xff]  ;;  %vm1518_vm12 = vmand %vm226_vm3, %vm231_vm8  ;;  %v1029_v34 = vld [vmem:[%s1404_s25 + $0x98] sm:$0xff]  ;;  %p1206_p0 = pneg %p1205_p12 }
  0x46   : > { %v314_v38 = vmul.f32 %v1126_v10, %v313_v26  ;;  %v310_v51 = vadd.f32 %v309_v32, %v308_v37  ;;  %v304_v54 = vsel %vm290_vm0, %v288_v40, 0.0  ;;  %v303_v58 = vadd.f32 %v302_v53, %v301_v44  ;;  %v1021_v36 = vld [vmem:[%s1397_s8 + $0xb8] sm:$0xff]  ;;  %v1012_v39 = vld [vmem:[%s1397_s8 + $0x70] sm:$0xff]  ;;  %v1026_v5 = vld [vmem:[%s1404_s25 + $0x80] sm:$0xff] }
  0x47   : > { %v296_v59 = vsel %vm290_vm0, %v279_v45, 0.0  ;;  %v297_v60 = vsel %vm290_vm0, %v283_v46, 0.0  ;;  %v299_v61 = vsel %vm290_vm0, %v287_v47, 0.0  ;;  %v278_v0 = vsub.f32 %v254_v48, %v266_v55  ;;  %v1033_v37 = vld [vmem:[%s1404_s25 + $0xb8] sm:$0xff]  ;;  %v1016_v42 = vld [vmem:[%s1397_s8 + $0x90] sm:$0xff]  ;;  %v1023_v55 = vld [vmem:[%s1404_s25 + $0x68] sm:$0xff]  ;;  %p1211_p2 = pnand %p1210_p1, %p1206_p0 }
  0x48   : > { %v315_v52 = vadd.f32 %v1126_v10, %v314_v38  ;;  %v298_v63 = vadd.f32 %v297_v60, %v296_v59  ;;  %v282_v1 = vsub.f32 %v258_v49, %v270_v56  ;;  %v305_v12 = vadd.f32 %v304_v54, %v303_v58  ;;  %v1024_v43 = vld [vmem:[%s1404_s25 + $0x70] sm:$0xff]  ;;  %v1015_v54 = vld [vmem:[%s1397_s8 + $0x88] sm:$0xff] }
  0x49   : > { %v286_v13 = vsub.f32 %v262_v50, %v274_v57  ;;  %vm218_vm10 = vcmp.lt.s32.totalorder %v1412_v3, %v1433_v14  ;;  %v291_v16 = vsel %vm290_vm0, %v278_v0, 0.0  ;;  %v1263_v22 = vmov 0.0   ;;  %v1028_v44 = vld [vmem:[%s1404_s25 + $0x90] sm:$0xff]  ;;  %v1011_v50 = vld [vmem:[%s1397_s8 + $0x68] sm:$0xff]  ;;  %v1010_v0 = vld [vmem:[%s1397_s8 + $0x60] sm:$0xff] }
  0x4a   : > { %v1483_v62 = vsel %vm316_vm4, %v1126_v10, %v315_v52  ;;  %v1262_v10 = vmov 0.25   ;;  %v300_v15 = vadd.f32 %v299_v61, %v298_v63  ;;  %v292_v17 = vsel %vm290_vm0, %v282_v1, 0.0  ;;  %vm219_vm13 = vmand %vm1448_vm5, %vm218_vm10  ;;  %v1020_v46 = vld [vmem:[%s1397_s8 + $0xb0] sm:$0xff]  ;;  %v1027_v56 = vld [vmem:[%s1404_s25 + $0x88] sm:$0xff] }
  0x4b   : > { %v321_v11 = vmul.f32 %v1483_v62, %v310_v51  ;;  %991 = vmatpush.msk.msra.mxu1 %vm1491_vm9, %v1262_v10  ;;  %v320_v7 = vmul.f32 %v1483_v62, %v305_v12  ;;  %v293_v18 = vadd.f32 %v292_v17, %v291_v16  ;;  %v294_v19 = vsel %vm290_vm0, %v286_v13, 0.0  ;;  %v1032_v47 = vld [vmem:[%s1404_s25 + $0xb0] sm:$0xff]  ;;  %v1019_v59 = vld [vmem:[%s1397_s8 + $0xa8] sm:$0xff]  ;;  %v1014_v13 = vld [vmem:[%s1397_s8 + $0x80] sm:$0xff] }
  0x4c   : > { %v319_v20 = vmul.f32 %v1483_v62, %v300_v15  ;;  %v1532_v23 = vsel %vm219_vm13, 0.25, %v1263_v22  ;;  %vm225_vm14 = vcmp.ge.s32.totalorder %v1410_v2, %v1419_v6  ;;  %vm230_vm15 = vcmp.lt.s32.totalorder %v1410_v2, %v1428_v9  ;;  %v1031_v60 = vld [vmem:[%s1404_s25 + $0xa8] sm:$0xff]  ;;  %v1018_v17 = vld [vmem:[%s1397_s8 + $0xa0] sm:$0xff] }
  0x4d   : > { %337 = vmatpush.msra.mxu0 %v321_v11  ;;  %992 = vmatpush.msk.msra.mxu1 %vm1506_vm11, %v1262_v10  ;;  %v295_v8 = vadd.f32 %v294_v19, %v293_v18  ;;  %vm234_vm1 = vmand %vm225_vm14, %vm230_vm15  ;;  %v248_v25 = vadd.s32 4294967295, %v1412_v3  ;;  %v251_v26 = vadd.s32 1, %v1412_v3  ;;  %v1264_v9 = vmov 1.0   ;;  %v1030_v14 = vld [vmem:[%s1404_s25 + $0xa0] sm:$0xff] }
  0x4e   : > { %v242_v28 = vadd.s32 4294967295, %v1410_v2  ;;  %v245_v29 = vadd.s32 1, %v1410_v2  ;;  %vm368_vm6 = vcmask 64512   ;;  %v605_v40 = vsub.f32 %v1021_v36, %v1033_v37 }
  0x4f   : > { %338 = vmatpush.msra.mxu0 %v320_v7  ;;  %993 = vmatpush.msk.msra.mxu1 %vm1518_vm12, %v1262_v10  ;;  %v318_v21 = vmul.f32 %v1483_v62, %v295_v8  ;;  %vm1544_vm2 = vcmp.eq.s32.totalorder %v1410_v2, %v248_v25  ;;  %vm1549_vm3 = vcmp.eq.s32.totalorder %v1410_v2, %v251_v26  ;;  %v1013_v2 = vld [vmem:[%s1397_s8 + $0x78] sm:$0xff] }
  0x50   : > { %vm243_vm4 = vcmp.eq.s32.totalorder %v1412_v3, %v242_v28  ;;  %vm246_vm5 = vcmp.eq.s32.totalorder %v1412_v3, %v245_v29  ;;  %v1017_v3 = vld [vmem:[%s1397_s8 + $0x98] sm:$0xff]  ;;  %v597_v35 = vsub.f32 %v1013_v2, %v1025_v33  ;;  %v596_v48 = vsub.f32 %v1012_v39, %v1024_v43 }
  0x51   : > { %339 = vmatpush.msra.mxu0 %v319_v20  ;;  %994 = vmatpush.msk.msra.mxu1 %vm234_vm1, %v1262_v10  ;;  %v1569_v30 = vsel %vm243_vm4, 1.0, %v1263_v22  ;;  %v1571_v31 = vsel %vm246_vm5, 1.0, %v1263_v22  ;;  %v601_v38 = vsub.f32 %v1017_v3, %v1029_v34  ;;  %v600_v49 = vsub.f32 %v1016_v42, %v1028_v44 }
  0x52   : > { %v621_v41 = vsel %vm290_vm0, %v597_v35, 0.0  ;;  %v624_v52 = vsel %vm290_vm0, %v605_v40, 0.0  ;;  %v604_v53 = vsub.f32 %v1020_v46, %v1032_v47  ;;  %v616_v57 = vsel %vm290_vm0, %v596_v48, 0.0 }
  0x53   : > { %340 = vmatpush.msra.mxu0 %v318_v21  ;;  %1004 = vmatpush.msk.msrb.mxu1 %vm1549_vm3, %v1264_v9  ;;  %v622_v45 = vsel %vm290_vm0, %v601_v38, 0.0  ;;  %v617_v58 = vsel %vm290_vm0, %v600_v49, 0.0  ;;  %v595_v61 = vsub.f32 %v1011_v50, %v1023_v55  ;;  %v599_v63 = vsub.f32 %v1015_v54, %v1027_v56 }
  0x54   : > { %990 = vmatmul.msk.f32.vlgmr.msra.gmra.mxu0 %vm290_vm0, %v1532_v23  ;;  %v623_v51 = vadd.f32 %v622_v45, %v621_v41  ;;  %v618_v4 = vadd.f32 %v617_v58, %v616_v57  ;;  %v619_v11 = vsel %vm290_vm0, %v604_v53, 0.0  ;;  %v603_v12 = vsub.f32 %v1019_v59, %v1031_v60 }
  0x55   : > { %1002 = vmatpush.msk.msrb.mxu0 %vm1544_vm2, %v1264_v9  ;;  %v611_v15 = vsel %vm290_vm0, %v595_v61, 0.0  ;;  %v612_v16 = vsel %vm290_vm0, %v599_v63, 0.0  ;;  %v598_v18 = vsub.f32 %v1014_v13, %v1026_v5  ;;  %v602_v22 = vsub.f32 %v1018_v17, %v1030_v14 }
  0x56   : > { %v625_v1 = vadd.f32 %v624_v52, %v623_v51  ;;  %v620_v20 = vadd.f32 %v619_v11, %v618_v4  ;;  %v613_v8 = vadd.f32 %v612_v16, %v611_v15  ;;  %v614_v21 = vsel %vm290_vm0, %v603_v12, 0.0 }
  0x57   : > { %v607_v25 = vsel %vm290_vm0, %v598_v18, 0.0  ;;  %v609_v2 = vsel %vm290_vm0, %v602_v22, 0.0 }
  0x58   : > { %v629_v19 = vmul.f32 %v625_v1, %v1483_v62  ;;  %v628_v26 = vmul.f32 %v620_v20, %v1483_v62  ;;  %v615_v28 = vadd.f32 %v614_v21, %v613_v8 }
  0x5a   : > { %642 = vmatpush.msra.mxu0 %v629_v19  ;;  %v627_v3 = vmul.f32 %v615_v28, %v1483_v62 }
  0x5c   : > { %643 = vmatpush.msra.mxu0 %v628_v26 }
  0x5e   : > { %644 = vmatpush.msra.mxu0 %v627_v3 }
  0xd1   : > { %v342_v24 = vpop.f32.mrf.mxu0 }
  0xd2   : > { %995 = vmatmul.msk.f32.vlgmr.msra.gmra.mxu1 %vm290_vm0, %v342_v24 }
  0xd3   : > { %1035 = vmatpush.msk.msra.mxu1 %vm1491_vm9, %v1262_v10 }
  0xd5   : > { %1036 = vmatpush.msk.msra.mxu1 %vm1506_vm11, %v1262_v10 }
  0xd7   : > { %1037 = vmatpush.msk.msra.mxu1 %vm1518_vm12, %v1262_v10 }
  0xd9   : > { %1038 = vmatpush.msk.msra.mxu1 %vm234_vm1, %v1262_v10  ;;  %v1022_v10 = vld [vmem:[%s1404_s25 + $0x60] sm:$0xff] }
  0xda   : > { %v594_v7 = vsub.f32 %v1010_v0, %v1022_v10 }
  0xdc   : > { %v606_v24 = vsel %vm290_vm0, %v594_v7, 0.0 }
  0xdd   : > { %v608_v29 = vadd.f32 %v607_v25, %v606_v24 }
  0xdf   : > { %v610_v33 = vadd.f32 %v609_v2, %v608_v29 }
  0xe1   : > { %v626_v34 = vmul.f32 %v610_v33, %v1483_v62 }
  0xe3   : > { %645 = vmatpush.msra.mxu0 %v626_v34 }
 0x14f   : > { %v1573_v32 = vpop.f32.mrf.mxu1 }
 0x150   : > { %387 = vmatpush.msra.mxu2 %v1573_v32  ;;  %410 = vmatpush.msra.mxu3 %v1573_v32 }
 0x151   : > { %996 = vmatmul.msk.f32.vlgmr.msra.gmra.mxu2 %vm368_vm6, %v1569_v30  ;;  %997 = vmatmul.msk.f32.vlgmr.msra.gmra.mxu3 %vm368_vm6, %v1571_v31 }
 0x152   : > { %998 = vmatpush.msk.msrb.mxu2 %vm1544_vm2, %v1264_v9  ;;  %1000 = vmatpush.msk.msrb.mxu3 %vm1549_vm3, %v1264_v9 }
 0x154   : > { %1006 = vmatpush.msk.msra.mxu2 %vm1544_vm2, %v1264_v9  ;;  %1008 = vmatpush.msk.msra.mxu3 %vm1549_vm3, %v1264_v9 }
 0x159   : > { %999 = vmatmul.msk.f32.vlgmr.msrb.gmra.mxu2 %vm368_vm6, %v1573_v32  ;;  %1001 = vmatmul.msk.f32.vlgmr.msrb.gmra.mxu3 %vm368_vm6, %v1573_v32 }
 0x1d4   : > { %v389_v35 = vpop.f32.mrf.mxu2  ;;  %v412_v36 = vpop.f32.mrf.mxu3 }
 0x1d5   : > { %1003 = vmatmul.msk.f32.vlgmr.msrb.gmra.mxu0 %vm368_vm6, %v389_v35  ;;  %1005 = vmatmul.msk.f32.vlgmr.msrb.gmra.mxu1 %vm368_vm6, %v389_v35  ;;  %v463_v38 = vsub.f32 %v1573_v32, %v389_v35  ;;  %v466_v41 = vsub.f32 %v1573_v32, %v412_v36 }
 0x1d6   : > { %1007 = vmatmul.msk.f32.vlgmr.msra.gmra.mxu2 %vm368_vm6, %v412_v36  ;;  %1009 = vmatmul.msk.f32.vlgmr.msra.gmra.mxu3 %vm368_vm6, %v412_v36 }
 0x1d7   : > { %1042 = vmatpush.msk.msrb.mxu0 %vm1544_vm2, %v1264_v9  ;;  %1044 = vmatpush.msk.msrb.mxu1 %vm1549_vm3, %v1264_v9  ;;  %v464_v44 = vmul.f32 %v463_v38, %v463_v38  ;;  %v467_v46 = vmul.f32 %v466_v41, %v466_v41 }
 0x1dc   : > { %v435_v62 = vpop.f32.mrf.mxu2  ;;  %v457_v37 = vpop.f32.mrf.mxu3 }
 0x1dd   : > { %v438_v39 = vsub.f32 %v1573_v32, %v435_v62  ;;  %v460_v40 = vsub.f32 %v1573_v32, %v457_v37  ;;  %1034 = vmatmul.msk.f32.vlgmr.msra.gmra.mxu0 %vm290_vm0, %v1532_v23 }
 0x1de   : > { %1050 = vmatpush.msk.msra.mxu0 %vm1544_vm2, %v1264_v9 }
 0x1df   : > { %v439_v42 = vmul.f32 %v438_v39, %v438_v39  ;;  %v461_v43 = vmul.f32 %v460_v40, %v460_v40 }
 0x1e1   : > { %v462_v45 = vadd.f32 %v461_v43, %v439_v42 }
 0x1e3   : > { %v465_v47 = vadd.f32 %v464_v44, %v462_v45 }
 0x1e5   : > { %v468_v48 = vadd.f32 %v467_v46, %v465_v47 }
 0x252   : > { %v489_v49 = vpop.f32.mrf.mxu0  ;;  %v512_v51 = vpop.f32.mrf.mxu1 }
 0x253   : > { %v492_v50 = vsub.f32 %v1573_v32, %v489_v49  ;;  %v515_v23 = vsub.f32 %v1573_v32, %v512_v51 }
 0x255   : > { %v493_v52 = vmul.f32 %v492_v50, %v492_v50  ;;  %v516_v56 = vmul.f32 %v515_v23, %v515_v23 }
 0x257   : > { %v494_v53 = vadd.f32 %v493_v52, %v468_v48 }
 0x259   : > { %v538_v54 = vpop.f32.mrf.mxu2  ;;  %v561_v55 = vpop.f32.mrf.mxu3  ;;  %v517_v60 = vadd.f32 %v516_v56, %v494_v53 }
 0x25a   : > { %v541_v57 = vsub.f32 %v1573_v32, %v538_v54  ;;  %v564_v58 = vsub.f32 %v1573_v32, %v561_v55  ;;  %v647_v59 = vpop.f32.mrf.mxu0 }
 0x25b   : > { %1039 = vmatmul.msk.f32.vlgmr.msra.gmra.mxu1 %vm290_vm0, %v647_v59 }
 0x25c   : > { %v542_v61 = vmul.f32 %v541_v57, %v541_v57  ;;  %1052 = vmatpush.msk.msra.mxu1 %vm1549_vm3, %v1264_v9  ;;  %v565_v0 = vmul.f32 %v564_v58, %v564_v58 }
 0x25e   : > { %v543_v63 = vadd.f32 %v542_v61, %v517_v60 }
 0x260   : > { %v566_v1 = vadd.f32 %v565_v0, %v543_v63 }
 0x262   : > { %567 = vst.msk [vmem:[%s1665_s26] sm:$0xff] %vm368_vm6, %v566_v1 }
 0x2d8   : > { %v670_v4 = vpop.f32.mrf.mxu1 }
 0x2d9   : > { %688 = vmatpush.msrb.mxu2 %v670_v4  ;;  %708 = vmatpush.msrb.mxu3 %v670_v4 }
 0x2da   : > { %1043 = vmatmul.msk.f32.vlgmr.msrb.gmra.mxu0 %vm368_vm6, %v670_v4  ;;  %1045 = vmatmul.msk.f32.vlgmr.msrb.gmra.mxu1 %vm368_vm6, %v670_v4 }
 0x2db   : > { %1040 = vmatmul.msk.f32.vlgmr.msrb.gmra.mxu2 %vm368_vm6, %v1569_v30  ;;  %1041 = vmatmul.msk.f32.vlgmr.msrb.gmra.mxu3 %vm368_vm6, %v1571_v31 }
 0x2dc   : > { %1046 = vmatpush.msk.msra.mxu2 %vm1544_vm2, %v1264_v9  ;;  %1048 = vmatpush.msk.msra.mxu3 %vm1549_vm3, %v1264_v9 }
 0x357   : > { %v733_v30 = vpop.f32.mrf.mxu0  ;;  %v755_v31 = vpop.f32.mrf.mxu1 }
 0x358   : > { %v736_v12 = vsub.f32 %v670_v4, %v733_v30  ;;  %v758_v27 = vsub.f32 %v670_v4, %v755_v31 }
 0x35a   : > { %v737_v10 = vmul.f32 %v736_v12, %v736_v12  ;;  %v759_v5 = vmul.f32 %v758_v27, %v758_v27 }
 0x35c   : > { %v760_v9 = vadd.f32 %v759_v5, %v737_v10 }
 0x35e   : > { %v690_v32 = vpop.f32.mrf.mxu2  ;;  %v710_v11 = vpop.f32.mrf.mxu3 }
 0x35f   : > { %1047 = vmatmul.msk.f32.vlgmr.msra.gmra.mxu2 %vm368_vm6, %v690_v32  ;;  %1049 = vmatmul.msk.f32.vlgmr.msra.gmra.mxu3 %vm368_vm6, %v690_v32  ;;  %v761_v13 = vsub.f32 %v670_v4, %v690_v32  ;;  %v764_v15 = vsub.f32 %v670_v4, %v710_v11 }
 0x360   : > { %1051 = vmatmul.msk.f32.vlgmr.msra.gmra.mxu0 %vm368_vm6, %v710_v11  ;;  %1053 = vmatmul.msk.f32.vlgmr.msra.gmra.mxu1 %vm368_vm6, %v710_v11 }
 0x361   : > { %v762_v6 = vmul.f32 %v761_v13, %v761_v13  ;;  %v765_v18 = vmul.f32 %v764_v15, %v764_v15 }
 0x363   : > { %v763_v16 = vadd.f32 %v762_v6, %v760_v9 }
 0x365   : > { %v766_v22 = vadd.f32 %v765_v18, %v763_v16 }
 0x3dd   : > { %v836_v17 = vpop.f32.mrf.mxu0  ;;  %v859_v8 = vpop.f32.mrf.mxu1 }
 0x3de   : > { %v839_v21 = vsub.f32 %v670_v4, %v836_v17  ;;  %v862_v25 = vsub.f32 %v670_v4, %v859_v8 }
 0x3e0   : > { %v840_v29 = vmul.f32 %v839_v21, %v839_v21  ;;  %v863_v3 = vmul.f32 %v862_v25, %v862_v25 }
 0x3e2   : > { %v787_v14 = vpop.f32.mrf.mxu2  ;;  %v810_v7 = vpop.f32.mrf.mxu3 }
 0x3e3   : > { %v790_v19 = vsub.f32 %v670_v4, %v787_v14  ;;  %v813_v20 = vsub.f32 %v670_v4, %v810_v7 }
 0x3e5   : > { %v791_v24 = vmul.f32 %v790_v19, %v790_v19  ;;  %v814_v28 = vmul.f32 %v813_v20, %v813_v20 }
 0x3e7   : > { %v792_v26 = vadd.f32 %v791_v24, %v766_v22 }
 0x3e9   : > { %v815_v2 = vadd.f32 %v814_v28, %v792_v26 }
 0x3eb   : > { %v841_v33 = vadd.f32 %v840_v29, %v815_v2 }
 0x3ed   : > { %v864_v34 = vadd.f32 %v863_v3, %v841_v33 }
 0x3ef   : > { %1054 = vst.msk [vmem:[%s1665_s26 + $0x8] sm:$0xff] %vm368_vm6, %v864_v34 }
 0x3f0   : > { %1214 = shalt.err (!%p1211_p2)
}
 0x3f1   : > { %s1265_s22 = smov 128   ;;  %s1266_s8 = smov 8  }
 0x3f2   : > { %1070 = dma.vmem_to_hbm [thread:$0]  (%p1327_p10), %s881_s17, 256, %s883_s29, %s868_s13, %s1265_s22, %s1265_s22, %s1266_s8  }
 0x3f3 PF: > { %p1084_p3 = scmp.ge.s32.totalorder %s1257_s12, 2  ;;  %s897_s28 = sand.u32 1, %s1245_s9  }
 0x3f4   : > { %s898_s25 = scalar_lea.sflag [#allocation4], %s897_s28 }
 0x3f5   : > { %p1080_p4 = pnand %p1084_p3, %p1331_p11 }
 0x3f7   : > { %p1081_p5 = pneg %p1080_p4 }
 0x3f9   : > { %1240 = dma.done.wait (%p1081_p5), %s898_s25, 256  }
 0x3fa   : > { %1242 = vsyncadd (%p1081_p5), %s898_s25, 4294967040  ;;  %p18_p7 = scmp.ge.s32.totalorder %s1307_s15, 6   ;;  %s1740_s9 = smov %s1249_s10 }
 0x3fb   : > { %s1741_s10 = smov %s1253_s11  ;;  %s1742_s11 = smov %s1319_s18 }
 0x3fc   : > { %s1743_s12 = smov %s1307_s15  ;;  %20 = sbr.rel (!%p18_p7) target bundleno = 7 (0x7), region = 89 }
 0x401   :  { %904 = vsyncpa [#allocation3], 1 }
 0x402   :  { %906 = vsyncpa [#allocation3 + $0x1], 1 }
 0x403   :  { %907 = vsyncpa [#allocation6], 1 }
 0x404   :  { %909 = vsyncpa [#allocation6 + $0x1], 1 }
 0x405   :  { %910 = vsyncpa [#allocation4], 1 }
 0x406   :  { %912 = vsyncpa [#allocation4 + $0x1], 1 }

</bundles_post_ra>
